<compile_context>
chip_gen: v7x
topology: tpu7x:2x2x1
jax: 0.10.0
libtpu: 0.0.40
codegen_flags: <defaults>
</compile_context>

<pallas_src>
import jax
import jax.numpy as jnp
from jax.experimental import pallas as pl
from jax.experimental.pallas import tpu as pltpu


def _round_up(v: int, mult: int) -> int:
    return ((v + mult - 1) // mult) * mult


def _mwe_kernel(x_ref, w_ref, b_ref, o_ref):
    # x_ref: (TM, K_p), w_ref: (K_p, N_p), b_ref: (1, N_p), o_ref: (TM, N_p)
    acc = jnp.dot(x_ref[...], w_ref[...], preferred_element_type=jnp.float32)
    o_ref[...] = (acc + b_ref[...]).astype(o_ref.dtype)


def fold_weight(weight):
    """PyTorch Linear weight [D_out, 2*D_in] -> folded, transposed [D_in, D_out].

    concat([x, x], -1) @ W.T == x @ (W[:, :D_in] + W[:, D_in:]).T
    Do this ONCE at parameter-prep time (hoisted out of the forward path).
    """
    out_size, two_in = weight.shape
    in_size = two_in // 2
    return (weight[:, :in_size] + weight[:, in_size:]).T  # [D_in, D_out]


def mwe_forward(x, w_folded, bias, *, tm: int = 256):
    """x: [..., D_in]; w_folded: [D_in, D_out] (from fold_weight); bias: [D_out].

    Returns [..., D_out].
    """
    in_size, out_size = w_folded.shape
    lead = x.shape[:-1]
    m = 1
    for d in lead:
        m *= d

    # Lane-dense / MXU-aligned padded shapes.
    k_p = _round_up(in_size, 128)    # contraction dim, MXU depth
    n_p = _round_up(out_size, 128)   # output lanes -> unmasked full-width stores
    m_p = _round_up(max(m, 1), tm)   # row tiles (multiple of 256: v6e granule, v5e 128)

    x2d = x.reshape(m, in_size)
    x_pad = jnp.pad(x2d, ((0, m_p - m), (0, k_p - in_size)))
    w_pad = jnp.pad(w_folded, ((0, k_p - in_size), (0, n_p - out_size)))
    b_pad = jnp.pad(bias.reshape(1, out_size), ((0, 0), (0, n_p - out_size)))

    grid = (m_p // tm,)

    out_pad = pl.pallas_call(
        _mwe_kernel,
        out_shape=jax.ShapeDtypeStruct((m_p, n_p), x.dtype),
        grid_spec=pltpu.PrefetchScalarGridSpec(
            num_scalar_prefetch=0,
            grid=grid,
            in_specs=[
                pl.BlockSpec((tm, k_p), lambda i: (i, 0)),     # x row tile
                pl.BlockSpec((k_p, n_p), lambda i: (0, 0)),    # weight: resident
                pl.BlockSpec((1, n_p), lambda i: (0, 0)),      # bias: resident
            ],
            out_specs=pl.BlockSpec((tm, n_p), lambda i: (i, 0)),
        ),
        compiler_params=pltpu.CompilerParams(
            # Row tiles are independent -> shard across TensorCores (v7x: 2 TCs).
            dimension_semantics=("parallel",),
        ),
    )(x_pad, w_pad, b_pad)

    return out_pad[:m, :out_size].reshape(*lead, out_size)


if __name__ == "__main__":
    input_size = 32
    output_size = 32
    batch, seq = 2, 8

    key = jax.random.PRNGKey(0)
    kx, kw, kb = jax.random.split(key, 3)

    # Parameters with nn.Linear(2*input_size, output_size) shapes/init bounds.
    bound = 1.0 / jnp.sqrt(2.0 * input_size)
    weight = jax.random.uniform(kw, (output_size, 2 * input_size),
                                jnp.float32, -bound, bound)
    bias = jax.random.uniform(kb, (output_size,), jnp.float32, -bound, bound)

    x = jax.random.normal(kx, (batch, seq, input_size), jnp.float32)

    # Fold weights once (outside the per-call path), then jit the forward so the
    # padding/layout plumbing const-folds and fuses around the pallas_call.
    w_folded = fold_weight(weight)
    fwd = jax.jit(lambda xx: mwe_forward(xx, w_folded, bias))

    out = fwd(x)
    jax.block_until_ready(out)

    # Reference: identical math to the PyTorch module (concat + Linear).
    z_ref = jnp.concatenate([x, x], axis=-1)
    ref = z_ref @ weight.T + bias
    assert out.shape == (batch, seq, output_size)
    assert jnp.allclose(out, ref, atol=1e-5, rtol=1e-5)

    print("KERNEL_OK")
</pallas_src>

<mosaic_0001>
module attributes {stable_mosaic.version = 11 : i64} {
  func.func @_mwe_kernel(%arg0: i32, %arg1: memref<256x128xf32, #tpu.memory_space<vmem>>, %arg2: memref<128x128xf32, #tpu.memory_space<vmem>>, %arg3: memref<1x128xf32, #tpu.memory_space<vmem>>, %arg4: memref<256x128xf32, #tpu.memory_space<vmem>>) attributes {dimension_semantics = [#tpu.dimension_semantics<parallel>], iteration_bounds = array<i64: 1>, scalar_prefetch = 0 : i64, scratch_operands = 0 : i64, tpu.core_type = #tpu.core_type<tc>, window_params = [{transform_indices = @transform_0, window_bounds = array<i64: 256, 128>}, {pipeline_mode = #tpu.pipeline_mode<synchronous>, transform_indices = @transform_1, window_bounds = array<i64: 128, 128>}, {pipeline_mode = #tpu.pipeline_mode<synchronous>, transform_indices = @transform_2, window_bounds = array<i64: 1, 128>}, {transform_indices = @transform_3, window_bounds = array<i64: 256, 128>}]} {
    %c0 = arith.constant 0 : index
    %c0_0 = arith.constant 0 : index
    %0 = vector.load %arg1[%c0, %c0_0] : memref<256x128xf32, #tpu.memory_space<vmem>>, vector<256x128xf32>
    %c0_1 = arith.constant 0 : index
    %c0_2 = arith.constant 0 : index
    %1 = vector.load %arg2[%c0_1, %c0_2] : memref<128x128xf32, #tpu.memory_space<vmem>>, vector<128x128xf32>
    %cst = arith.constant dense<0.000000e+00> : vector<256x128xf32>
    %2 = tpu.matmul %0, %1, %cst {dimension_numbers = #tpu.dot_dimension_numbers<[1], [0], [0], [1], [0, 0, 1, 1], [], []>} : vector<256x128xf32>, vector<128x128xf32>, vector<256x128xf32> -> vector<256x128xf32>
    %c0_3 = arith.constant 0 : index
    %c0_4 = arith.constant 0 : index
    %3 = vector.load %arg3[%c0_3, %c0_4] : memref<1x128xf32, #tpu.memory_space<vmem>>, vector<1x128xf32>
    %4 = vector.broadcast %3 : vector<1x128xf32> to vector<256x128xf32>
    %5 = arith.addf %2, %4 : vector<256x128xf32>
    %c0_5 = arith.constant 0 : index
    %c0_6 = arith.constant 0 : index
    %6 = vector.load %arg4[%c0_5, %c0_6] : memref<256x128xf32, #tpu.memory_space<vmem>>, vector<256x128xf32>
    tpu.vector_store %arg4[%c0_5, %c0_6], %5 {strides = array<i32>} : memref<256x128xf32, #tpu.memory_space<vmem>>, vector<256x128xf32>,
    return
  }
  func.func @transform_0(%arg0: i32) -> (i32, i32) {
    %c0_i32 = arith.constant 0 : i32
    %c0_i32_0 = arith.constant 0 : i32
    return %arg0, %c0_i32 : i32, i32
  }
  func.func @transform_1(%arg0: i32) -> (i32, i32) {
    %c0_i32 = arith.constant 0 : i32
    %c0_i32_0 = arith.constant 0 : i32
    %c0_i32_1 = arith.constant 0 : i32
    return %c0_i32, %c0_i32_0 : i32, i32
  }
  func.func @transform_2(%arg0: i32) -> (i32, i32) {
    %c0_i32 = arith.constant 0 : i32
    %c0_i32_0 = arith.constant 0 : i32
    %c0_i32_1 = arith.constant 0 : i32
    return %c0_i32, %c0_i32_0 : i32, i32
  }
  func.func @transform_3(%arg0: i32) -> (i32, i32) {
    %c0_i32 = arith.constant 0 : i32
    %c0_i32_0 = arith.constant 0 : i32
    return %arg0, %c0_i32 : i32, i32
  }
}

</mosaic_0001>

<bundles_post_ra>
// kernel: _lambda_.1
= control target key start
LH: loop header
LB: loop body
LE: loop exit
PB: predicated region body
PF: predicated region fallthrough
CT: control target
= control target key end

     0   :  { %s804_s1 = inlined_call_operand.vmem [shape: f32[128,128], index: 1, kind: input, shape index: {}]   ;;  %s805_s0 = inlined_call_operand.vmem [shape: f32[256,128], index: 0, kind: input, shape index: {}]   ;;  %s806_s2 = inlined_call_operand.vmem [shape: f32[1,128], index: 2, kind: input, shape index: {}]   ;;  %s807_s3 = inlined_call_operand.vmem [shape: f32[256,128], index: 3, kind: output, shape index: {}]  }
   0x1   :  { %v46_v0 = vld [vmem:[%s804_s1] sm:$0xff]  ;;  %v47_v1 = vld [vmem:[%s804_s1 + $0x8] sm:$0xff]  ;;  %v48_v2 = vld [vmem:[%s804_s1 + $0x10] sm:$0xff] }
   0x2   :  { %v459_v3 = vpack.c.bf16 %v47_v1, %v46_v0  ;;  %v49_v4 = vld [vmem:[%s804_s1 + $0x18] sm:$0xff]  ;;  %v50_v6 = vld [vmem:[%s804_s1 + $0x20] sm:$0xff]  ;;  %v51_v7 = vld [vmem:[%s804_s1 + $0x28] sm:$0xff] }
   0x3   :  { %v463_v5 = vpack.c.bf16 %v49_v4, %v48_v2  ;;  %v467_v8 = vpack.c.bf16 %v51_v7, %v50_v6  ;;  %v14_v9 = vld [vmem:[%s805_s0] sm:$0xff]  ;;  %v52_v11 = vld [vmem:[%s804_s1 + $0x30] sm:$0xff]  ;;  %v53_v12 = vld [vmem:[%s804_s1 + $0x38] sm:$0xff] }
   0x4   :  { %460 = vmatprep.subr.bf16.mxu0 %v459_v3  ;;  %491 = vmatprep.subr.bf16.mxu1 %v459_v3  ;;  %v30_v10 = vld [vmem:[%s805_s0 + $0x80] sm:$0xff]  ;;  %v471_v13 = vpack.c.bf16 %v53_v12, %v52_v11  ;;  %v55_v15 = vld [vmem:[%s804_s1 + $0x48] sm:$0xff]  ;;  %v56_v17 = vld [vmem:[%s804_s1 + $0x50] sm:$0xff] }
   0x5   :  { %462 = vmatpush3.bf16.msra.mxu0 %v459_v3  ;;  %499 = vmatpush3.bf16.msra.mxu1 %v459_v3  ;;  %v54_v14 = vld [vmem:[%s804_s1 + $0x40] sm:$0xff]  ;;  %v57_v18 = vld [vmem:[%s804_s1 + $0x58] sm:$0xff]  ;;  %v59_v21 = vld [vmem:[%s804_s1 + $0x68] sm:$0xff] }
   0x6   :  { %464 = vmatprep.subr.bf16.mxu0 %v463_v5  ;;  %492 = vmatprep.subr.bf16.mxu1 %v463_v5  ;;  %v475_v16 = vpack.c.bf16 %v55_v15, %v54_v14  ;;  %v479_v19 = vpack.c.bf16 %v57_v18, %v56_v17  ;;  %v58_v20 = vld [vmem:[%s804_s1 + $0x60] sm:$0xff]  ;;  %v60_v23 = vld [vmem:[%s804_s1 + $0x70] sm:$0xff]  ;;  %v61_v24 = vld [vmem:[%s804_s1 + $0x78] sm:$0xff] }
   0x7   :  { %411 = vmatprep.mubr.f32.mxu0 %v14_v9  ;;  %435 = vmatprep.mubr.f32.mxu1 %v30_v10  ;;  %v483_v22 = vpack.c.bf16 %v59_v21, %v58_v20  ;;  %v487_v25 = vpack.c.bf16 %v61_v24, %v60_v23  ;;  %v15_v26 = vld [vmem:[%s805_s0 + $0x8] sm:$0xff]  ;;  %v16_v28 = vld [vmem:[%s805_s0 + $0x10] sm:$0xff]  ;;  %v17_v30 = vld [vmem:[%s805_s0 + $0x18] sm:$0xff] }
   0x8   :  { %v31_v27 = vld [vmem:[%s805_s0 + $0x88] sm:$0xff]  ;;  %v32_v29 = vld [vmem:[%s805_s0 + $0x90] sm:$0xff]  ;;  %v33_v31 = vld [vmem:[%s805_s0 + $0x98] sm:$0xff] }
   0x9   :  { %466 = vmatpush3.bf16.msra.mxu0 %v463_v5  ;;  %500 = vmatpush3.bf16.msra.mxu1 %v463_v5  ;;  %v18_v32 = vld [vmem:[%s805_s0 + $0x20] sm:$0xff]  ;;  %v19_v34 = vld [vmem:[%s805_s0 + $0x28] sm:$0xff]  ;;  %v20_v36 = vld [vmem:[%s805_s0 + $0x30] sm:$0xff] }
   0xa   :  { %468 = vmatprep.subr.bf16.mxu0 %v467_v8  ;;  %493 = vmatprep.subr.bf16.mxu1 %v467_v8  ;;  %v34_v33 = vld [vmem:[%s805_s0 + $0xa0] sm:$0xff]  ;;  %v35_v35 = vld [vmem:[%s805_s0 + $0xa8] sm:$0xff]  ;;  %v36_v37 = vld [vmem:[%s805_s0 + $0xb0] sm:$0xff] }
   0xb   :  { %v21_v38 = vld [vmem:[%s805_s0 + $0x38] sm:$0xff]  ;;  %v22_v40 = vld [vmem:[%s805_s0 + $0x40] sm:$0xff]  ;;  %v23_v42 = vld [vmem:[%s805_s0 + $0x48] sm:$0xff] }
   0xc   :  { %v37_v39 = vld [vmem:[%s805_s0 + $0xb8] sm:$0xff]  ;;  %v38_v41 = vld [vmem:[%s805_s0 + $0xc0] sm:$0xff]  ;;  %v39_v43 = vld [vmem:[%s805_s0 + $0xc8] sm:$0xff] }
   0xd   :  { %470 = vmatpush3.bf16.msra.mxu0 %v467_v8  ;;  %501 = vmatpush3.bf16.msra.mxu1 %v467_v8  ;;  %v24_v44 = vld [vmem:[%s805_s0 + $0x50] sm:$0xff]  ;;  %v25_v46 = vld [vmem:[%s805_s0 + $0x58] sm:$0xff]  ;;  %v26_v48 = vld [vmem:[%s805_s0 + $0x60] sm:$0xff] }
   0xe   :  { %472 = vmatprep.subr.bf16.mxu0 %v471_v13  ;;  %494 = vmatprep.subr.bf16.mxu1 %v471_v13  ;;  %v40_v45 = vld [vmem:[%s805_s0 + $0xd0] sm:$0xff]  ;;  %v41_v47 = vld [vmem:[%s805_s0 + $0xd8] sm:$0xff]  ;;  %v42_v49 = vld [vmem:[%s805_s0 + $0xe0] sm:$0xff] }
   0xf   :  { %v27_v50 = vld [vmem:[%s805_s0 + $0x68] sm:$0xff]  ;;  %v28_v52 = vld [vmem:[%s805_s0 + $0x70] sm:$0xff]  ;;  %v29_v54 = vld [vmem:[%s805_s0 + $0x78] sm:$0xff] }
  0x10   :  { %v43_v51 = vld [vmem:[%s805_s0 + $0xe8] sm:$0xff]  ;;  %v44_v53 = vld [vmem:[%s805_s0 + $0xf0] sm:$0xff]  ;;  %v45_v55 = vld [vmem:[%s805_s0 + $0xf8] sm:$0xff] }
  0x11   :  { %474 = vmatpush3.bf16.msra.mxu0 %v471_v13  ;;  %502 = vmatpush3.bf16.msra.mxu1 %v471_v13  ;;  %v674_v56 = vld [vmem:[%s806_s2] ss:$0 sm:$0xff] }
  0x12   :  { %476 = vmatprep.subr.bf16.mxu0 %v475_v16  ;;  %495 = vmatprep.subr.bf16.mxu1 %v475_v16 }
  0x15   :  { %478 = vmatpush3.bf16.msra.mxu0 %v475_v16  ;;  %503 = vmatpush3.bf16.msra.mxu1 %v475_v16 }
  0x16   :  { %480 = vmatprep.subr.bf16.mxu0 %v479_v19  ;;  %496 = vmatprep.subr.bf16.mxu1 %v479_v19 }
  0x19   :  { %482 = vmatpush3.bf16.msra.mxu0 %v479_v19  ;;  %504 = vmatpush3.bf16.msra.mxu1 %v479_v19 }
  0x1a   :  { %484 = vmatprep.subr.bf16.mxu0 %v483_v22  ;;  %497 = vmatprep.subr.bf16.mxu1 %v483_v22 }
  0x1d   :  { %486 = vmatpush3.bf16.msra.mxu0 %v483_v22  ;;  %505 = vmatpush3.bf16.msra.mxu1 %v483_v22 }
  0x1e   :  { %488 = vmatprep.subr.bf16.mxu0 %v487_v25  ;;  %498 = vmatprep.subr.bf16.mxu1 %v487_v25 }
  0x21   :  { %490 = vmatpush3.bf16.msra.mxu0 %v487_v25  ;;  %506 = vmatpush3.bf16.msra.mxu1 %v487_v25 }
  0x24   :  { %412 = vmatmul.mubr.f32.vlgmr.msra.gmra.mrb[0].mxu0 %v15_v26  ;;  %436 = vmatmul.mubr.f32.vlgmr.msra.gmra.mrb[0].mxu1 %v31_v27 }
  0x25   :  { %414 = vmatprep.mubr.f32.mxu0 %v16_v28  ;;  %438 = vmatprep.mubr.f32.mxu1 %v32_v29 }
  0x28   :  { %415 = vmatmul.mubr.f32.gmra.mrb[2].mxu0 %v17_v30  ;;  %439 = vmatmul.mubr.f32.gmra.mrb[2].mxu1 %v33_v31 }
  0x29   :  { %417 = vmatprep.mubr.f32.mxu0 %v18_v32  ;;  %441 = vmatprep.mubr.f32.mxu1 %v34_v33 }
  0x2c   :  { %418 = vmatmul.mubr.f32.gmra.mrb[4].mxu0 %v19_v34  ;;  %442 = vmatmul.mubr.f32.gmra.mrb[4].mxu1 %v35_v35 }
  0x2d   :  { %420 = vmatprep.mubr.f32.mxu0 %v20_v36  ;;  %444 = vmatprep.mubr.f32.mxu1 %v36_v37 }
  0x30   :  { %421 = vmatmul.mubr.f32.gmra.mrb[6].mxu0 %v21_v38  ;;  %445 = vmatmul.mubr.f32.gmra.mrb[6].mxu1 %v37_v39 }
  0x31   :  { %423 = vmatprep.mubr.f32.mxu0 %v22_v40  ;;  %447 = vmatprep.mubr.f32.mxu1 %v38_v41 }
  0x34   :  { %424 = vmatmul.mubr.f32.gmra.mrb[8].mxu0 %v23_v42  ;;  %448 = vmatmul.mubr.f32.gmra.mrb[8].mxu1 %v39_v43 }
  0x35   :  { %426 = vmatprep.mubr.f32.mxu0 %v24_v44  ;;  %450 = vmatprep.mubr.f32.mxu1 %v40_v45 }
  0x38   :  { %427 = vmatmul.mubr.f32.gmra.mrb[10].mxu0 %v25_v46  ;;  %451 = vmatmul.mubr.f32.gmra.mrb[10].mxu1 %v41_v47 }
  0x39   :  { %429 = vmatprep.mubr.f32.mxu0 %v26_v48  ;;  %453 = vmatprep.mubr.f32.mxu1 %v42_v49 }
  0x3c   :  { %430 = vmatmul.mubr.f32.gmra.mrb[12].mxu0 %v27_v50  ;;  %454 = vmatmul.mubr.f32.gmra.mrb[12].mxu1 %v43_v51 }
  0x3d   :  { %432 = vmatprep.mubr.f32.mxu0 %v28_v52  ;;  %456 = vmatprep.mubr.f32.mxu1 %v44_v53 }
  0x40   :  { %433 = vmatmul.mubr.f32.gmra.mrb[14].mxu0 %v29_v54  ;;  %457 = vmatmul.mubr.f32.gmra.mrb[14].mxu1 %v45_v55 }
  0xf7   :  { %v413_v57 = vpop.f32.mrb[0].mxu0  ;;  %v437_v58 = vpop.f32.mrb[0].mxu1 }
  0xf8   :  { %v141_v59 = vadd.f32 %v413_v57, %v674_v56  ;;  %v221_v60 = vadd.f32 %v437_v58, %v674_v56  ;;  %v135_v61 = vpop.f32.mrb[1].mxu0  ;;  %v215_v62 = vpop.f32.mrb[1].mxu1 }
  0xf9   :  { %v136_v63 = vadd.f32 %v674_v56, %v135_v61  ;;  %v216_v0 = vadd.f32 %v674_v56, %v215_v62 }
  0xfa   :  { %295 = vst [vmem:[%s807_s3 + $0x8] sm:$0xff] %v141_v59  ;;  %311 = vst [vmem:[%s807_s3 + $0x88] sm:$0xff] %v221_v60 }
  0xfb   :  { %294 = vst [vmem:[%s807_s3] sm:$0xff] %v136_v63  ;;  %310 = vst [vmem:[%s807_s3 + $0x80] sm:$0xff] %v216_v0  ;;  %v416_v1 = vpop.f32.mrb[2].mxu0  ;;  %v440_v2 = vpop.f32.mrb[2].mxu1 }
  0xfc   :  { %v151_v3 = vadd.f32 %v416_v1, %v674_v56  ;;  %v231_v4 = vadd.f32 %v440_v2, %v674_v56  ;;  %v145_v5 = vpop.f32.mrb[3].mxu0  ;;  %v225_v6 = vpop.f32.mrb[3].mxu1 }
  0xfd   :  { %v146_v7 = vadd.f32 %v674_v56, %v145_v5  ;;  %v226_v8 = vadd.f32 %v674_v56, %v225_v6 }
  0xfe   :  { %297 = vst [vmem:[%s807_s3 + $0x18] sm:$0xff] %v151_v3  ;;  %313 = vst [vmem:[%s807_s3 + $0x98] sm:$0xff] %v231_v4 }
  0xff   :  { %296 = vst [vmem:[%s807_s3 + $0x10] sm:$0xff] %v146_v7  ;;  %312 = vst [vmem:[%s807_s3 + $0x90] sm:$0xff] %v226_v8  ;;  %v419_v9 = vpop.f32.mrb[4].mxu0  ;;  %v443_v10 = vpop.f32.mrb[4].mxu1 }
 0x100   :  { %v161_v11 = vadd.f32 %v419_v9, %v674_v56  ;;  %v241_v12 = vadd.f32 %v443_v10, %v674_v56  ;;  %v155_v13 = vpop.f32.mrb[5].mxu0  ;;  %v235_v14 = vpop.f32.mrb[5].mxu1 }
 0x101   :  { %v156_v15 = vadd.f32 %v674_v56, %v155_v13  ;;  %v236_v16 = vadd.f32 %v674_v56, %v235_v14 }
 0x102   :  { %299 = vst [vmem:[%s807_s3 + $0x28] sm:$0xff] %v161_v11  ;;  %315 = vst [vmem:[%s807_s3 + $0xa8] sm:$0xff] %v241_v12 }
 0x103   :  { %298 = vst [vmem:[%s807_s3 + $0x20] sm:$0xff] %v156_v15  ;;  %314 = vst [vmem:[%s807_s3 + $0xa0] sm:$0xff] %v236_v16  ;;  %v422_v17 = vpop.f32.mrb[6].mxu0  ;;  %v446_v18 = vpop.f32.mrb[6].mxu1 }
 0x104   :  { %v171_v19 = vadd.f32 %v422_v17, %v674_v56  ;;  %v251_v20 = vadd.f32 %v446_v18, %v674_v56  ;;  %v165_v21 = vpop.f32.mrb[7].mxu0  ;;  %v245_v22 = vpop.f32.mrb[7].mxu1 }
 0x105   :  { %v166_v23 = vadd.f32 %v674_v56, %v165_v21  ;;  %v246_v24 = vadd.f32 %v674_v56, %v245_v22 }
 0x106   :  { %301 = vst [vmem:[%s807_s3 + $0x38] sm:$0xff] %v171_v19  ;;  %317 = vst [vmem:[%s807_s3 + $0xb8] sm:$0xff] %v251_v20 }
 0x107   :  { %300 = vst [vmem:[%s807_s3 + $0x30] sm:$0xff] %v166_v23  ;;  %316 = vst [vmem:[%s807_s3 + $0xb0] sm:$0xff] %v246_v24  ;;  %v425_v25 = vpop.f32.mrb[8].mxu0  ;;  %v449_v26 = vpop.f32.mrb[8].mxu1 }
 0x108   :  { %v181_v27 = vadd.f32 %v425_v25, %v674_v56  ;;  %v261_v28 = vadd.f32 %v449_v26, %v674_v56  ;;  %v175_v29 = vpop.f32.mrb[9].mxu0  ;;  %v255_v30 = vpop.f32.mrb[9].mxu1 }
 0x109   :  { %v176_v31 = vadd.f32 %v674_v56, %v175_v29  ;;  %v256_v32 = vadd.f32 %v674_v56, %v255_v30 }
 0x10a   :  { %303 = vst [vmem:[%s807_s3 + $0x48] sm:$0xff] %v181_v27  ;;  %319 = vst [vmem:[%s807_s3 + $0xc8] sm:$0xff] %v261_v28 }
 0x10b   :  { %302 = vst [vmem:[%s807_s3 + $0x40] sm:$0xff] %v176_v31  ;;  %318 = vst [vmem:[%s807_s3 + $0xc0] sm:$0xff] %v256_v32  ;;  %v428_v33 = vpop.f32.mrb[10].mxu0  ;;  %v452_v34 = vpop.f32.mrb[10].mxu1 }
 0x10c   :  { %v191_v35 = vadd.f32 %v428_v33, %v674_v56  ;;  %v271_v36 = vadd.f32 %v452_v34, %v674_v56  ;;  %v185_v37 = vpop.f32.mrb[11].mxu0  ;;  %v265_v38 = vpop.f32.mrb[11].mxu1 }
 0x10d   :  { %v186_v39 = vadd.f32 %v674_v56, %v185_v37  ;;  %v266_v40 = vadd.f32 %v674_v56, %v265_v38 }
 0x10e   :  { %305 = vst [vmem:[%s807_s3 + $0x58] sm:$0xff] %v191_v35  ;;  %321 = vst [vmem:[%s807_s3 + $0xd8] sm:$0xff] %v271_v36 }
 0x10f   :  { %304 = vst [vmem:[%s807_s3 + $0x50] sm:$0xff] %v186_v39  ;;  %320 = vst [vmem:[%s807_s3 + $0xd0] sm:$0xff] %v266_v40  ;;  %v431_v41 = vpop.f32.mrb[12].mxu0  ;;  %v455_v42 = vpop.f32.mrb[12].mxu1 }
 0x110   :  { %v201_v43 = vadd.f32 %v431_v41, %v674_v56  ;;  %v281_v44 = vadd.f32 %v455_v42, %v674_v56  ;;  %v195_v45 = vpop.f32.mrb[13].mxu0  ;;  %v275_v46 = vpop.f32.mrb[13].mxu1 }
 0x111   :  { %v196_v47 = vadd.f32 %v674_v56, %v195_v45  ;;  %v276_v48 = vadd.f32 %v674_v56, %v275_v46 }
 0x112   :  { %307 = vst [vmem:[%s807_s3 + $0x68] sm:$0xff] %v201_v43  ;;  %323 = vst [vmem:[%s807_s3 + $0xe8] sm:$0xff] %v281_v44 }
 0x113   :  { %306 = vst [vmem:[%s807_s3 + $0x60] sm:$0xff] %v196_v47  ;;  %322 = vst [vmem:[%s807_s3 + $0xe0] sm:$0xff] %v276_v48  ;;  %v434_v49 = vpop.f32.mrb[14].mxu0  ;;  %v458_v50 = vpop.f32.mrb[14].mxu1 }
 0x114   :  { %v211_v51 = vadd.f32 %v434_v49, %v674_v56  ;;  %v291_v52 = vadd.f32 %v458_v50, %v674_v56  ;;  %v205_v53 = vpop.f32.mrb[15].mxu0  ;;  %v285_v54 = vpop.f32.mrb[15].mxu1 }
 0x115   :  { %v206_v55 = vadd.f32 %v674_v56, %v205_v53  ;;  %v286_v57 = vadd.f32 %v674_v56, %v285_v54 }
 0x116   :  { %309 = vst [vmem:[%s807_s3 + $0x78] sm:$0xff] %v211_v51  ;;  %325 = vst [vmem:[%s807_s3 + $0xf8] sm:$0xff] %v291_v52 }
 0x117   :  { %308 = vst [vmem:[%s807_s3 + $0x70] sm:$0xff] %v206_v55  ;;  %324 = vst [vmem:[%s807_s3 + $0xf0] sm:$0xff] %v286_v57 }

</bundles_post_ra>
